<compile_context>
chip_gen: v5e
topology: v5e:2x2
jax: 0.10.0
libtpu: 0.0.40
codegen_flags: <defaults>
</compile_context>

<pallas_src>
import math
import functools

import jax
import jax.numpy as jnp
from jax import lax
from jax.experimental import pallas as pl
from jax.experimental.pallas import tpu as pltpu

# ---- model dims from the PyTorch script ----
hidden_size = 8
top_k = 6
input_size = top_k * 2                    # 12
output_size = 3
patch_size = 7
data_dim = patch_size * patch_size * 3    # 147
dim_q = 4

LANE = 128
_VMEM = pl.BlockSpec(memory_space=pltpu.MemorySpace.VMEM)


def _align8(n):
    return (n + 7) & ~7


def _is_pow2(n):
    return n > 0 and (n & (n - 1)) == 0


def make_layout(b, t, hidden, out_dim, kdim, dq):
    """Row layout of the packed (rows, 128) parameter slab. Each section 8-row aligned."""
    G = 4 * hidden
    layout = {}
    off = 0

    def add(name, nrows, ncols):
        nonlocal off
        assert ncols <= LANE
        layout[name] = (off, nrows, ncols)
        off = _align8(off + nrows)

    add("wqk", kdim, 2 * dq)       # Q||K projection, 1/sqrt(k) folded into Q half
    add("bqk", 1, 2 * dq)
    add("weo", b * t, t * G)       # re-indexed w_ih (flatten + block-diag fold)
    add("whh", hidden, G)
    add("bl", 1, G)                # b_ih + b_hh
    add("wfc", hidden, out_dim)
    add("bfc", 1, out_dim)
    return layout, off             # off already 8-aligned


# ---------------- fused SelfAttention + LSTM cell + FC kernel ----------------
def build_kernel(layout, *, batch, tokens, hidden, out_dim, kdim, dq):
    BT = batch * tokens
    G = 4 * hidden

    def kernel(x_ref, p_ref, st_ref, out_ref):
        def get(name):
            r0, nr, nc = layout[name]
            return p_ref[r0:r0 + nr, 0:nc]           # static slice views of the slab

        x = x_ref[...]                                                   # (BT, K) f32

        # Q||K in one MXU matmul; 1/sqrt(K) already folded into the Q half.
        qk = jnp.dot(x, get("wqk"), preferred_element_type=jnp.float32) + get("bqk")
        q = qk[:, 0:dq]                                                  # (BT, dq)
        k = qk[:, dq:2 * dq]                                             # (BT, dq)

        # Full (BT, BT) scores = q @ k^T; zero everything outside the per-batch TxT
        # diagonal blocks (equivalent to torch.bmm over the batch dim).
        s = lax.dot_general(q, k, (((1,), (1,)), ((), ())),
                            preferred_element_type=jnp.float32)          # (BT, BT)
        r_id = lax.broadcasted_iota(jnp.int32, (BT, BT), 0)
        c_id = lax.broadcasted_iota(jnp.int32, (BT, BT), 1)
        if _is_pow2(tokens):
            sh = int(math.log2(tokens))
            same = (r_id >> sh) == (c_id >> sh)
        else:
            same = (r_id // tokens) == (c_id // tokens)
        s_bd = jnp.where(same, s, 0.0)

        # gates_x = flatten(scaled_dot) @ w_ih, with the flatten + block selection folded
        # into weo (BT, T*G). Per-row group select = one compare + one where; the row
        # reduction goes to the MXU as ones(1,BT) @ a_sel.
        a = jnp.dot(s_bd, get("weo"), preferred_element_type=jnp.float32)  # (BT, T*G)
        r2 = lax.broadcasted_iota(jnp.int32, (BT, tokens * G), 0)
        c2 = lax.broadcasted_iota(jnp.int32, (BT, tokens * G), 1)
        c_grp = (c2 >> int(math.log2(G))) if _is_pow2(G) else (c2 // G)
        r_sel = (r2 & (tokens - 1)) if _is_pow2(tokens) else (r2 % tokens)
        a_sel = jnp.where(c_grp == r_sel, a, 0.0)
        ones = jnp.ones((1, BT), jnp.float32)
        gsum = jnp.dot(ones, a_sel, preferred_element_type=jnp.float32)    # (1, T*G)
        gates_x = gsum[:, 0:G]
        for ti in range(1, tokens):                                        # static, tiny
            gates_x = gates_x + gsum[:, ti * G:(ti + 1) * G]

        # LSTM cell (PyTorch gate order i, f, g, o), seq_len = 1, batch = 1.
        st = st_ref[...]                                                   # (1, 2H)
        H = hidden
        h0 = st[:, 0:H]
        c0 = st[:, H:2 * H]
        gates = (gates_x
                 + jnp.dot(h0, get("whh"), preferred_element_type=jnp.float32)
                 + get("bl"))                                              # (1, 4H)
        i_g = jax.nn.sigmoid(gates[:, 0 * H:1 * H])
        f_g = jax.nn.sigmoid(gates[:, 1 * H:2 * H])
        g_g = jnp.tanh(gates[:, 2 * H:3 * H])
        o_g = jax.nn.sigmoid(gates[:, 3 * H:4 * H])
        c1 = f_g * c0 + i_g * g_g
        h1 = o_g * jnp.tanh(c1)

        # FC + sigmoid.
        y = jax.nn.sigmoid(
            jnp.dot(h1, get("wfc"), preferred_element_type=jnp.float32) + get("bfc"))

        # Single lane-dense (1, 128) store: [ y | h1 | c1 | zero pad ].
        pad = LANE - (out_dim + 2 * H)
        out_ref[...] = jnp.concatenate(
            [y, h1, c1, jnp.zeros((1, pad), jnp.float32)], axis=-1)

    return kernel


def neural_network_forward(x2d, param_slab, state, *, batch, tokens, hidden, out_dim, dq):
    BT, kdim = x2d.shape
    layout, _ = make_layout(batch, tokens, hidden, out_dim, kdim, dq)
    kern = build_kernel(layout, batch=batch, tokens=tokens, hidden=hidden,
                        out_dim=out_dim, kdim=kdim, dq=dq)
    G = 4 * hidden
    flops = (2 * BT * kdim * 2 * dq        # Q||K projection
             + 2 * BT * dq * BT            # scores
             + 2 * BT * BT * tokens * G    # s_bd @ weo
             + 2 * BT * tokens * G         # ones @ a_sel
             + 2 * hidden * G              # h0 @ whh
             + 2 * hidden * out_dim)       # fc
    bytes_accessed = 4 * (x2d.size + param_slab.size + state.size + LANE)
    packed = pl.pallas_call(
        kern,
        out_shape=jax.ShapeDtypeStruct((1, LANE), jnp.float32),
        in_specs=[_VMEM, _VMEM, _VMEM],
        out_specs=_VMEM,
        cost_estimate=pl.CostEstimate(flops=flops,
                                      transcendentals=6 * hidden + out_dim,
                                      bytes_accessed=bytes_accessed),
    )(x2d, param_slab, state)
    y = packed[:, 0:out_dim]
    h1 = packed[:, out_dim:out_dim + hidden]
    c1 = packed[:, out_dim + hidden:out_dim + 2 * hidden]
    return y, h1, c1


# ---------------- parameter init (deterministic, PyTorch-style uniform fan-in) ----------------
def init_raw_params(key):
    ks = jax.random.split(key, 10)
    s_a = 1.0 / math.sqrt(data_dim)
    wq = jax.random.uniform(ks[0], (data_dim, dim_q), jnp.float32, -s_a, s_a)
    bq = jax.random.uniform(ks[1], (1, dim_q), jnp.float32, -s_a, s_a)
    wk = jax.random.uniform(ks[2], (data_dim, dim_q), jnp.float32, -s_a, s_a)
    bk = jax.random.uniform(ks[3], (1, dim_q), jnp.float32, -s_a, s_a)

    s_l = 1.0 / math.sqrt(hidden_size)
    w_ih = jax.random.uniform(ks[4], (input_size, 4 * hidden_size), jnp.float32, -s_l, s_l)
    w_hh = jax.random.uniform(ks[5], (hidden_size, 4 * hidden_size), jnp.float32, -s_l, s_l)
    b_ih = jax.random.uniform(ks[6], (1, 4 * hidden_size), jnp.float32, -s_l, s_l)
    b_hh = jax.random.uniform(ks[7], (1, 4 * hidden_size), jnp.float32, -s_l, s_l)
    w_fc = jax.random.uniform(ks[8], (hidden_size, output_size), jnp.float32, -s_l, s_l)
    b_fc = jax.random.uniform(ks[9], (1, output_size), jnp.float32, -s_l, s_l)
    return wq, bq, wk, bk, w_ih, w_hh, b_ih, b_hh, w_fc, b_fc


def prep_params(raw, b, t):
    """One-time host-side rewrite + packing of the raw (PyTorch-layout) weights into one slab."""
    wq, bq, wk, bk, w_ih, w_hh, b_ih, b_hh, w_fc, b_fc = raw
    kdim, dq = wq.shape
    hidden = w_hh.shape[0]
    out_dim = w_fc.shape[1]
    assert b * t * t == w_ih.shape[0], "model requires B*T*T == input_size"

    # torch divides scores by sqrt(k = data_dim); fold the scale into the Q projection.
    scale = 1.0 / math.sqrt(float(kdim))
    wqk = jnp.concatenate([wq * scale, wk], axis=1)    # (K, 2*dim_q)
    bqk = jnp.concatenate([bq * scale, bk], axis=1)    # (1, 2*dim_q)

    # Fold the (B,T,T) -> (1, B*T*T) flatten + block-diag selection into w_ih:
    # weo[c, t*4H + g] = w_ih[T*T*(c//T) + T*t + (c%T), g].
    c_idx = jnp.arange(b * t)
    parts = []
    for ti in range(t):
        rows = (t * t) * (c_idx // t) + t * ti + (c_idx % t)
        parts.append(w_ih[rows, :])
    w_eo = jnp.concatenate(parts, axis=1)              # (B*T, T*4H)

    b_lstm = b_ih + b_hh                               # combined LSTM bias (1, 4H)

    layout, total_rows = make_layout(b, t, hidden, out_dim, kdim, dq)
    slab = jnp.zeros((total_rows, LANE), jnp.float32)

    def put(s, name, mat):
        r0, nr, nc = layout[name]
        assert mat.shape == (nr, nc)
        return s.at[r0:r0 + nr, 0:nc].set(mat)

    slab = put(slab, "wqk", wqk)
    slab = put(slab, "bqk", bqk)
    slab = put(slab, "weo", w_eo)
    slab = put(slab, "whh", w_hh)
    slab = put(slab, "bl", b_lstm)
    slab = put(slab, "wfc", w_fc)
    slab = put(slab, "bfc", b_fc)
    return slab


# ---------------- pure-JAX mirror of the PyTorch forward (verification only) ----------------
def reference_forward(x, raw, h0, c0):
    wq, bq, wk, bk, w_ih, w_hh, b_ih, b_hh, w_fc, b_fc = raw
    _, _, k = x.shape
    hp = lax.Precision.HIGHEST
    q = jnp.einsum('btk,kd->btd', x, wq, precision=hp) + bq
    kk = jnp.einsum('btk,kd->btd', x, wk, precision=hp) + bk
    dot = jnp.einsum('bid,bjd->bij', q, kk, precision=hp) / jnp.sqrt(jnp.float32(k))
    xl = dot.reshape(1, -1)                            # torch x.view(1, 1, -1)
    gates = (jnp.dot(xl, w_ih, precision=hp) + jnp.dot(h0, w_hh, precision=hp)
             + b_ih + b_hh)
    H = h0.shape[-1]
    i = jax.nn.sigmoid(gates[:, 0:H])
    f = jax.nn.sigmoid(gates[:, H:2 * H])
    g = jnp.tanh(gates[:, 2 * H:3 * H])
    o = jax.nn.sigmoid(gates[:, 3 * H:4 * H])
    c1 = f * c0 + i * g
    h1 = o * jnp.tanh(c1)
    y = jax.nn.sigmoid(jnp.dot(h1, w_fc, precision=hp) + b_fc)
    return y, h1, c1


if __name__ == "__main__":
    key = jax.random.PRNGKey(0)
    pkey, xkey = jax.random.split(key)
    raw = init_raw_params(pkey)

    B, T = 3, 2                       # B*T*T == input_size == 12 (required by the view)
    slab = prep_params(raw, B, T)
    x = jax.random.normal(xkey, (B, T, data_dim), jnp.float32)

    # initial hidden/cell state (zeros, like LSTMModel.__init__ / reset), packed h||c
    h0 = jnp.zeros((1, hidden_size), jnp.float32)
    c0 = jnp.zeros((1, hidden_size), jnp.float32)
    state = jnp.concatenate([h0, c0], axis=-1)         # (1, 2H)

    x2d = x.reshape(B * T, data_dim)                   # contiguous, free reshape in XLA

    fwd = jax.jit(functools.partial(neural_network_forward,
                                    batch=B, tokens=T, hidden=hidden_size,
                                    out_dim=output_size, dq=dim_q))
    y, h1, c1 = fwd(x2d, slab, state)
    jax.block_until_ready((y, h1, c1))
    assert y.shape == (1, output_size)

    # verify against the pure-JAX mirror of the PyTorch forward
    y_ref, h_ref, c_ref = reference_forward(x, raw, h0, c0)
    assert bool(jnp.allclose(y, y_ref, atol=5e-3, rtol=5e-3))
    assert bool(jnp.allclose(h1, h_ref, atol=5e-3, rtol=5e-3))
    assert bool(jnp.allclose(c1, c_ref, atol=5e-3, rtol=5e-3))

    print("KERNEL_OK")
</pallas_src>

<mosaic_0001>
module attributes {stable_mosaic.version = 11 : i64} {
  func.func @kernel(%arg0: memref<6x147xf32, #tpu.memory_space<vmem>>, %arg1: memref<200x128xf32, #tpu.memory_space<vmem>>, %arg2: memref<1x16xf32, #tpu.memory_space<vmem>>, %arg3: memref<1x128xf32, #tpu.memory_space<vmem>>) attributes {dimension_semantics = [], scalar_prefetch = 0 : i64, scratch_operands = 0 : i64, tpu.core_type = #tpu.core_type<tc>} {
    %c0 = arith.constant 0 : index
    %c0_0 = arith.constant 0 : index
    %0 = vector.load %arg0[%c0, %c0_0] : memref<6x147xf32, #tpu.memory_space<vmem>>, vector<6x147xf32>
    %c0_1 = arith.constant 0 : index
    %c0_2 = arith.constant 0 : index
    %1 = vector.load %arg1[%c0_1, %c0_2] : memref<200x128xf32, #tpu.memory_space<vmem>>, vector<147x8xf32>
    %cst = arith.constant dense<0.000000e+00> : vector<6x8xf32>
    %2 = tpu.matmul %0, %1, %cst {dimension_numbers = #tpu.dot_dimension_numbers<[1], [0], [0], [1], [0, 0, 1, 1], [], []>} : vector<6x147xf32>, vector<147x8xf32>, vector<6x8xf32> -> vector<6x8xf32>
    %c152 = arith.constant 152 : index
    %c0_3 = arith.constant 0 : index
    %3 = vector.load %arg1[%c152, %c0_3] : memref<200x128xf32, #tpu.memory_space<vmem>>, vector<1x8xf32>
    %4 = vector.broadcast %3 : vector<1x8xf32> to vector<6x8xf32>
    %5 = arith.addf %2, %4 : vector<6x8xf32>
    %6 = vector.extract_strided_slice %5 {offsets = [0, 0], sizes = [6, 4], strides = [1, 1]} : vector<6x8xf32> to vector<6x4xf32>
    %7 = vector.extract_strided_slice %5 {offsets = [0, 4], sizes = [6, 4], strides = [1, 1]} : vector<6x8xf32> to vector<6x4xf32>
    %cst_4 = arith.constant dense<0.000000e+00> : vector<6x6xf32>
    %8 = tpu.matmul %6, %7, %cst_4 {dimension_numbers = #tpu.dot_dimension_numbers<[1], [1], [0], [0], [0, 0, 1, 0], [], []>} : vector<6x4xf32>, vector<6x4xf32>, vector<6x6xf32> -> vector<6x6xf32>
    %9 = tpu.iota {dimensions = array<i32: 0>} : vector<6x6xi32>
    %10 = tpu.iota {dimensions = array<i32: 1>} : vector<6x6xi32>
    %c1_i32 = arith.constant 1 : i32
    %11 = vector.broadcast %c1_i32 : i32 to vector<6x6xi32>
    %12 = arith.shrsi %9, %11 : vector<6x6xi32>
    %c1_i32_5 = arith.constant 1 : i32
    %13 = vector.broadcast %c1_i32_5 : i32 to vector<6x6xi32>
    %14 = arith.shrsi %10, %13 : vector<6x6xi32>
    %15 = arith.cmpi eq, %12, %14 : vector<6x6xi32>
    %cst_6 = arith.constant 0.000000e+00 : f32
    %16 = vector.broadcast %cst_6 : f32 to vector<6x6xf32>
    %17 = arith.select %15, %8, %16 : vector<6x6xi1>, vector<6x6xf32>
    %c160 = arith.constant 160 : index
    %c0_7 = arith.constant 0 : index
    %18 = vector.load %arg1[%c160, %c0_7] : memref<200x128xf32, #tpu.memory_space<vmem>>, vector<6x64xf32>
    %cst_8 = arith.constant dense<0.000000e+00> : vector<6x64xf32>
    %19 = tpu.matmul %17, %18, %cst_8 {dimension_numbers = #tpu.dot_dimension_numbers<[1], [0], [0], [1], [0, 0, 1, 1], [], []>} : vector<6x6xf32>, vector<6x64xf32>, vector<6x64xf32> -> vector<6x64xf32>
    %20 = tpu.iota {dimensions = array<i32: 0>} : vector<6x64xi32>
    %21 = tpu.iota {dimensions = array<i32: 1>} : vector<6x64xi32>
    %c5_i32 = arith.constant 5 : i32
    %22 = vector.broadcast %c5_i32 : i32 to vector<6x64xi32>
    %23 = arith.shrsi %21, %22 : vector<6x64xi32>
    %c1_i32_9 = arith.constant 1 : i32
    %24 = vector.broadcast %c1_i32_9 : i32 to vector<6x64xi32>
    %25 = arith.andi %20, %24 : vector<6x64xi32>
    %26 = arith.cmpi eq, %23, %25 : vector<6x64xi32>
    %cst_10 = arith.constant 0.000000e+00 : f32
    %27 = vector.broadcast %cst_10 : f32 to vector<6x64xf32>
    %28 = arith.select %26, %19, %27 : vector<6x64xi1>, vector<6x64xf32>
    %cst_11 = arith.constant 1.000000e+00 : f32
    %29 = vector.broadcast %cst_11 : f32 to vector<1x6xf32>
    %cst_12 = arith.constant dense<0.000000e+00> : vector<1x64xf32>
    %30 = tpu.matmul %29, %28, %cst_12 {dimension_numbers = #tpu.dot_dimension_numbers<[1], [0], [0], [1], [0, 0, 1, 1], [], []>} : vector<1x6xf32>, vector<6x64xf32>, vector<1x64xf32> -> vector<1x64xf32>
    %31 = vector.extract_strided_slice %30 {offsets = [0, 0], sizes = [1, 32], strides = [1, 1]} : vector<1x64xf32> to vector<1x32xf32>
    %32 = vector.extract_strided_slice %30 {offsets = [0, 32], sizes = [1, 32], strides = [1, 1]} : vector<1x64xf32> to vector<1x32xf32>
    %33 = arith.addf %31, %32 : vector<1x32xf32>
    %c0_13 = arith.constant 0 : index
    %c0_14 = arith.constant 0 : index
    %34 = vector.load %arg2[%c0_13, %c0_14] : memref<1x16xf32, #tpu.memory_space<vmem>>, vector<1x16xf32>
    %35 = vector.extract_strided_slice %34 {offsets = [0, 0], sizes = [1, 8], strides = [1, 1]} : vector<1x16xf32> to vector<1x8xf32>
    %36 = vector.extract_strided_slice %34 {offsets = [0, 8], sizes = [1, 8], strides = [1, 1]} : vector<1x16xf32> to vector<1x8xf32>
    %c168 = arith.constant 168 : index
    %c0_15 = arith.constant 0 : index
    %37 = vector.load %arg1[%c168, %c0_15] : memref<200x128xf32, #tpu.memory_space<vmem>>, vector<8x32xf32>
    %cst_16 = arith.constant dense<0.000000e+00> : vector<1x32xf32>
    %38 = tpu.matmul %35, %37, %cst_16 {dimension_numbers = #tpu.dot_dimension_numbers<[1], [0], [0], [1], [0, 0, 1, 1], [], []>} : vector<1x8xf32>, vector<8x32xf32>, vector<1x32xf32> -> vector<1x32xf32>
    %39 = arith.addf %33, %38 : vector<1x32xf32>
    %c176 = arith.constant 176 : index
    %c0_17 = arith.constant 0 : index
    %40 = vector.load %arg1[%c176, %c0_17] : memref<200x128xf32, #tpu.memory_space<vmem>>, vector<1x32xf32>
    %41 = arith.addf %39, %40 : vector<1x32xf32>
    %42 = vector.extract_strided_slice %41 {offsets = [0, 0], sizes = [1, 8], strides = [1, 1]} : vector<1x32xf32> to vector<1x8xf32>
    %43 = arith.negf %42 : vector<1x8xf32>
    %44 = math.exp %43 : vector<1x8xf32>
    %cst_18 = arith.constant 1.000000e+00 : f32
    %45 = vector.broadcast %cst_18 : f32 to vector<1x8xf32>
    %46 = arith.addf %45, %44 : vector<1x8xf32>
    %47 = arith.divf %45, %46 : vector<1x8xf32>
    %48 = vector.extract_strided_slice %41 {offsets = [0, 8], sizes = [1, 8], strides = [1, 1]} : vector<1x32xf32> to vector<1x8xf32>
    %49 = arith.negf %48 : vector<1x8xf32>
    %50 = math.exp %49 : vector<1x8xf32>
    %cst_19 = arith.constant 1.000000e+00 : f32
    %51 = vector.broadcast %cst_19 : f32 to vector<1x8xf32>
    %52 = arith.addf %51, %50 : vector<1x8xf32>
    %53 = arith.divf %51, %52 : vector<1x8xf32>
    %54 = vector.extract_strided_slice %41 {offsets = [0, 16], sizes = [1, 8], strides = [1, 1]} : vector<1x32xf32> to vector<1x8xf32>
    %55 = math.tanh %54 : vector<1x8xf32>
    %56 = vector.extract_strided_slice %41 {offsets = [0, 24], sizes = [1, 8], strides = [1, 1]} : vector<1x32xf32> to vector<1x8xf32>
    %57 = arith.negf %56 : vector<1x8xf32>
    %58 = math.exp %57 : vector<1x8xf32>
    %cst_20 = arith.constant 1.000000e+00 : f32
    %59 = vector.broadcast %cst_20 : f32 to vector<1x8xf32>
    %60 = arith.addf %59, %58 : vector<1x8xf32>
    %61 = arith.divf %59, %60 : vector<1x8xf32>
    %62 = arith.mulf %53, %36 : vector<1x8xf32>
    %63 = arith.mulf %47, %55 : vector<1x8xf32>
    %64 = arith.addf %62, %63 : vector<1x8xf32>
    %65 = math.tanh %64 : vector<1x8xf32>
    %66 = arith.mulf %61, %65 : vector<1x8xf32>
    %c184 = arith.constant 184 : index
    %c0_21 = arith.constant 0 : index
    %67 = vector.load %arg1[%c184, %c0_21] : memref<200x128xf32, #tpu.memory_space<vmem>>, vector<8x3xf32>
    %cst_22 = arith.constant dense<0.000000e+00> : vector<1x3xf32>
    %68 = tpu.matmul %66, %67, %cst_22 {dimension_numbers = #tpu.dot_dimension_numbers<[1], [0], [0], [1], [0, 0, 1, 1], [], []>} : vector<1x8xf32>, vector<8x3xf32>, vector<1x3xf32> -> vector<1x3xf32>
    %c192 = arith.constant 192 : index
    %c0_23 = arith.constant 0 : index
    %69 = vector.load %arg1[%c192, %c0_23] : memref<200x128xf32, #tpu.memory_space<vmem>>, vector<1x3xf32>
    %70 = arith.addf %68, %69 : vector<1x3xf32>
    %71 = arith.negf %70 : vector<1x3xf32>
    %72 = math.exp %71 : vector<1x3xf32>
    %cst_24 = arith.constant 1.000000e+00 : f32
    %73 = vector.broadcast %cst_24 : f32 to vector<1x3xf32>
    %74 = arith.addf %73, %72 : vector<1x3xf32>
    %75 = arith.divf %73, %74 : vector<1x3xf32>
    %cst_25 = arith.constant 0.000000e+00 : f32
    %76 = vector.broadcast %cst_25 : f32 to vector<1x109xf32>
    %77 = tpu.concatenate %75, %66, %64, %76 in 1 : vector<1x3xf32>, vector<1x8xf32>, vector<1x8xf32>, vector<1x109xf32> -> vector<1x128xf32>
    %c0_26 = arith.constant 0 : index
    %c0_27 = arith.constant 0 : index
    %78 = vector.load %arg3[%c0_26, %c0_27] : memref<1x128xf32, #tpu.memory_space<vmem>>, vector<1x128xf32>
    tpu.vector_store %arg3[%c0_26, %c0_27], %77 {strides = array<i32>} : memref<1x128xf32, #tpu.memory_space<vmem>>, vector<1x128xf32>,
    return
  }
}

</mosaic_0001>

<bundles_post_ra>
// kernel: neural_network_forward.1
= control target key start
LH: loop header
LB: loop body
LE: loop exit
PB: predicated region body
PF: predicated region fallthrough
CT: control target
= control target key end

     0   :  { %8 = vsyncpa [#allocation3], 0  ;;  %s489_s0 = inlined_call_operand.hbm [shape: f32[6,147], index: 0, kind: input, shape index: {}]   ;;  %s490_s1 = inlined_call_operand.hbm [shape: f32[200,128], index: 1, kind: input, shape index: {}]   ;;  %s491_s2 = inlined_call_operand.vmem [shape: f32[1,16], index: 2, kind: input, shape index: {}]   ;;  %s492_s3 = inlined_call_operand.vmem [shape: f32[1,128], index: 3, kind: output, shape index: {}]  }
   0x1   :  { %s15_s14 = sshll.u32 %s489_s0, 4  ;;  %s16_s14 = int_to_ptr.hbm [resolvable:$true] %s15_s14 }
   0x2   :  { %9 = vsyncpa [#allocation5], 0  ;;  %s435_s15 = smov [#allocation2]   ;;  %s25_s19 = sshll.u32 %s490_s1, 4  ;;  %s26_s19 = int_to_ptr.hbm [resolvable:$true] %s25_s19 }
   0x3   :  { %s17_s16 = sshll.u32 %s435_s15, 4  ;;  %s436_s20 = smov [#allocation4]   ;;  %s18_s16 = int_to_ptr.vmem [resolvable:$true] %s17_s16 }
   0x4   :  { %20 = dma.hbm_to_vmem [thread:$0]  %s16_s14, 256, %s18_s16, [#allocation3]  }
   0x5   :  { %s27_s21 = sshll.u32 %s436_s20, 4  ;;  %s437_s22 = smov 128   ;;  %s28_s21 = int_to_ptr.vmem [resolvable:$true] %s27_s21 }
   0x6   :  { %s438_s23 = smov 8  }
   0x7   :  { %33 = dma.hbm_to_vmem [thread:$0]  %s26_s19, 3200, %s28_s21, [#allocation5], %s437_s22, %s437_s22, %s438_s23  }
   0x8   :  { %431 = dma.done.wait [#allocation3], 256  }
   0x9   :  { %432 = vsyncadd [#allocation3], 4294967040 }
   0xa   :  { %433 = dma.done.wait [#allocation5], 3200  }
   0xb   :  { %434 = vsyncadd [#allocation5], 4294964096  ;;  %v61_v0 = vld [vmem:[#allocation4 + $0x78] sm:$0xff]  ;;  %v60_v1 = vld [vmem:[#allocation4 + $0x70] sm:$0xff]  ;;  %vm71_vm0 = vcmask 1042432   ;;  %vm67_vm1 = vcmask 154624   ;;  %v143_v28 = vlaneseq }
   0xc   :  { %75 = vmatpush.msra.mxu0 %v61_v0  ;;  %v59_v2 = vld [vmem:[#allocation4 + $0x68] sm:$0xff]  ;;  %v58_v3 = vld [vmem:[#allocation4 + $0x60] sm:$0xff]  ;;  %v64_v4 = vld [vmem:[#allocation4 + $0x90] sm:$0x7]  ;;  %s439_s0 = smov 124   ;;  %vm118_vm2 = vcmask 31744  }
   0xd   :  { %v63_v5 = vld [vmem:[#allocation4 + $0x88] sm:$0xff]  ;;  %v57_v6 = vld [vmem:[#allocation4 + $0x58] sm:$0xff]  ;;  %346 = vmatpush.msk.msra.mxu1 %vm71_vm0, %v64_v4  ;;  %v62_v7 = vld [vmem:[#allocation4 + $0x80] sm:$0xff]  ;;  %vm156_vm3 = vcmask 1045504   ;;  %v144_v29 = vshrl.u32 %v143_v28, 7  ;;  %v146_v30 = vand.u32 127, %v143_v28 }
   0xe   :  { %76 = vmatpush.msra.mxu0 %v60_v1  ;;  %v56_v8 = vld [vmem:[#allocation4 + $0x50] sm:$0xff]  ;;  %v45_v9 = vld [vmem:[#allocation2 + $0x8] sm:$0x3f]  ;;  %v55_v10 = vld [vmem:[#allocation4 + $0x48] sm:$0xff]  ;;  %vm152_vm5 = vcmask 48128   ;;  %vm217_vm6 = vcmask 64512  }
   0xf   :  { %109 = vmatpush.msra.mxu1 %v63_v5  ;;  %v54_v11 = vld [vmem:[#allocation4 + $0x40] sm:$0xff]  ;;  %v53_v12 = vld [vmem:[#allocation4 + $0x38] sm:$0xff]  ;;  %v52_v13 = vld [vmem:[#allocation4 + $0x30] sm:$0xff]  ;;  %v147_v31 = vshra.s32 %v144_v29, 1  ;;  %v148_v32 = vshra.s32 %v146_v30, 1  ;;  %v180_v37 = vshra.s32 %v146_v30, 5 }
  0x10   :  { %77 = vmatpush.msra.mxu0 %v59_v2  ;;  %v51_v14 = vld [vmem:[#allocation4 + $0x28] sm:$0xff]  ;;  %v50_v15 = vld [vmem:[#allocation4 + $0x20] sm:$0xff]  ;;  %v49_v16 = vld [vmem:[#allocation4 + $0x18] sm:$0xff]  ;;  %v181_v38 = vand.u32 1, %v144_v29  ;;  %v440_v41 = vmov 1.0   ;;  %s441_s25 = smov 96  }
  0x11   :  { %110 = vmatpush.msra.mxu1 %v62_v7  ;;  %v48_v17 = vld [vmem:[#allocation4 + $0x10] sm:$0xff]  ;;  %v47_v18 = vld [vmem:[#allocation4 + $0x8] sm:$0xff]  ;;  %v46_v19 = vld [vmem:[#allocation4] sm:$0xff]  ;;  %vm149_vm4 = vcmp.eq.s32.totalorder %v147_v31, %v148_v32  ;;  %s443_s26 = smov 3   ;;  %s444_s27 = smov 16   ;;  %vm334_vm15 = vcmask 23552  }
  0x12   :  { %78 = vmatpush.msra.mxu0 %v58_v3  ;;  %347 = vmatmul.msk.f32.vlgmr.msra.gmra.mxu1 %vm67_vm1, %v45_v9  ;;  %v44_v20 = vld [vmem:[#allocation2] sm:$0x3f]  ;;  %v370_v21 = vld [vmem:[#allocation4 + $0x98] ss:$0 sm:$0xff]  ;;  %v151_v27 = vld [vmem:[#allocation4 + $0xa0] sm:$0x3f]  ;;  %vm182_vm7 = vcmp.eq.s32.totalorder %v180_v37, %v181_v38 }
  0x13   :  { %350 = vmatpush.msk.msra.mxu3 %vm156_vm3, %v151_v27  ;;  %v216_v35 = vld [vmem:[#allocation4 + $0xa8] sm:$0xff]  ;;  %v215_v36 = vld [vmem:[%s491_s2] sm:$0x1]  ;;  %s442_s2 = smov 112   ;;  %v281_v5 = vld [vmem:[#allocation4 + $0xb8] sm:$0xff]  ;;  %s445_s28 = smov 107  }
  0x14   :  { %79 = vmatpush.msra.mxu0 %v57_v6  ;;  %v242_v46 = vld [vmem:[#allocation4 + $0xb0] sm:$0x1]  ;;  %303 = vmatpush.msrb.mxu1 %v281_v5  ;;  %s446_s29 = smov 104   ;;  %v282_v9 = vld [vmem:[#allocation4 + $0xc0] sm:$0x1] }
  0x16   :  { %80 = vmatpush.msra.mxu0 %v56_v8 }
  0x18   :  { %81 = vmatpush.msra.mxu0 %v55_v10 }
  0x1a   :  { %82 = vmatpush.msra.mxu0 %v54_v11 }
  0x1c   :  { %83 = vmatpush.msra.mxu0 %v53_v12 }
  0x1e   :  { %84 = vmatpush.msra.mxu0 %v52_v13 }
  0x20   :  { %85 = vmatpush.msra.mxu0 %v51_v14 }
  0x22   :  { %86 = vmatpush.msra.mxu0 %v50_v15 }
  0x24   :  { %87 = vmatpush.msra.mxu0 %v49_v16 }
  0x26   :  { %88 = vmatpush.msra.mxu0 %v48_v17 }
  0x28   :  { %89 = vmatpush.msra.mxu0 %v47_v18 }
  0x2a   :  { %90 = vmatpush.msra.mxu0 %v46_v19 }
  0x2b   :  { %91 = vmatmul.f32.vlgmr.msra.gmra.mxu0 %v44_v20 }
  0x8f   :  { %v112_v23 = vpop.f32.mrf.mxu1 }
  0xa8   :  { %v92_v22 = vpop.f32.mrf.mxu0 }
  0xa9   :  { %v93_v24 = vadd.f32 %v370_v21, %v92_v22 }
  0xab   :  { %v113_v25 = vadd.f32 %v112_v23, %v93_v24 }
  0xad   :  { %116 = vrot.lane.b32.xlu0 %v113_v25, %s439_s0 }
 0x11f   :  { %v117_v26 = vpop.permute.xlu0 %116 }
 0x120   :  { %348 = vmatpush.xpose.msk.msra.mxu2 %vm118_vm2, %v117_v26 }
 0x123   :  { %349 = vmatmul.msk.f32.vlgmr.msra.gmra.mxu2 %vm118_vm2, %v113_v25  ;;  %vm336_vm2 = vcmask 89088  }
 0x124   :  { %236 = vmatpush.msrb.mxu2 %v216_v35 }
 0x12b   :  { %354 = vmatmul.msk.f32.vlgmr.msrb.gmra.mxu2 %vm217_vm6, %v215_v36 }
 0x1a6   :  { %v140_v33 = vpop.f32.mrf.mxu2 }
 0x1a7   :  { %v150_v34 = vsel %vm149_vm4, %v140_v33, 0.0 }
 0x1a8   :  { %351 = vmatmul.msk.f32.vlgmr.msra.gmra.mxu3 %vm152_vm5, %v150_v34 }
 0x1ae   :  { %v238_v44 = vpop.f32.mrf.mxu2 }
 0x22b   :  { %v177_v39 = vpop.f32.mrf.mxu3 }
 0x22c   :  { %v183_v40 = vsel %vm182_vm7, %v177_v39, 0.0 }
 0x22d   :  { %352 = vmatpush.msk.msrb.mxu3 %vm156_vm3, %v183_v40 }
 0x22e   :  { %353 = vmatmul.msk.f32.vlgmr.msrb.gmra.mxu3 %vm152_vm5, %v440_v41 }
 0x2b1   :  { %v207_v42 = vpop.f32.mrf.mxu3 }
 0x2b2   :  { %211 = vrot.lane.b32.xlu0 %v207_v42, %s441_s25 }
 0x324   :  { %v212_v43 = vpop.permute.xlu0 %211 }
 0x325   :  { %v214_v45 = vadd.f32 %v212_v43, %v207_v42 }
 0x327   :  { %v241_v47 = vadd.f32 %v238_v44, %v214_v45 }
 0x329   :  { %v243_v48 = vadd.f32 %v242_v46, %v241_v47 }
 0x32b   :  { %371 = vtanh.f32 %v243_v48  ;;  %v355_v50 = vmul.f32 -1.442695, %v243_v48 }
 0x32d   :  { %373 = vpow2.f32 %v355_v50 }
 0x331   :  { %v372_v49 = vpop.eup %371 }
 0x332   :  { %266 = vrot.lane.b32.xlu1 %v372_v49, %s442_s2 }
 0x333   :  { %v374_v51 = vpop.eup %373 }
 0x334   :  { %v247_v52 = vadd.f32 1.0, %v374_v51 }
 0x336   :  { %375 = vrcp.f32 %v247_v52  ;;  %v259_v58 = vand.u32 2147483648, %v247_v52  ;;  %vm253_vm9 = vweird.f32 %v247_v52  ;;  %v257_v59 = vand.u32 2147483647, %v247_v52 }
 0x338   :  { %v260_v61 = vor.u32 1.1754944e-38, %v259_v58  ;;  %vm258_vm11 = vcmp.eq.f32.partialorder %v257_v59, 8.507059e+37 }
 0x33c   :  { %v376_v53 = vpop.eup %375 }
 0x33d   :  { %v249_v54 = vmul.f32 %v376_v53, %v247_v52  ;;  %vm254_vm8 = vweird.f32 %v376_v53 }
 0x33e   :  { %vm255_vm10 = vmor %vm253_vm9, %vm254_vm8 }
 0x33f   :  { %v250_v55 = vsub.f32 1.0, %v249_v54 }
 0x341   :  { %v251_v56 = vmul.f32 %v376_v53, %v250_v55 }
 0x343   :  { %v252_v57 = vadd.f32 %v376_v53, %v251_v56 }
 0x345   :  { %v256_v60 = vsel %vm255_vm10, %v376_v53, %v252_v57 }
 0x346   :  { %v261_v63 = vsel %vm258_vm11, %v260_v61, %v256_v60 }
 0x347   :  { %v264_v1 = vmul.f32 %v261_v63, %v215_v36 }
 0x3a4   :  { %v267_v62 = vpop.permute.xlu1 %266 }
 0x3a5   :  { %v269_v0 = vmul.f32 %v267_v62, %v261_v63 }
 0x3a7   :  { %271 = vrot.lane.b32.xlu1 %v269_v0, %s438_s23 }
 0x419   :  { %v272_v2 = vpop.permute.xlu1 %271 }
 0x41a   :  { %v274_v3 = vadd.f32 %v272_v2, %v264_v1 }
 0x41c   :  { %377 = vtanh.f32 %v274_v3  ;;  %331 = vrot.lane.b32.xlu1 %v274_v3, %s443_s26 }
 0x422   :  { %v378_v4 = vpop.eup %377 }
 0x423   :  { %277 = vrot.lane.b32.xlu2 %v378_v4, %s444_s27 }
 0x47d   :  { %v278_v6 = vpop.permute.xlu2 %277 }
 0x47e   :  { %v280_v7 = vmul.f32 %v278_v6, %v261_v63 }
 0x480   :  { %327 = vrot.lane.b32.xlu0 %v280_v7, %s445_s28  ;;  %284 = vrot.lane.b32.xlu2 %v280_v7, %s446_s29 }
 0x48e   :  { %v332_v26 = vpop.permute.xlu1 %331 }
 0x4da   :  { %v285_v8 = vpop.permute.xlu2 %284 }
 0x4db   :  { %356 = vmatmul.msk.f32.vlgmr.msrb.gmra.mxu1 %vm217_vm6, %v285_v8 }
 0x4f2   :  { %v328_v24 = vpop.permute.xlu0 %327 }
 0x558   :  { %v305_v10 = vpop.f32.mrf.mxu1 }
 0x559   :  { %v306_v11 = vadd.f32 %v305_v10, %v282_v9 }
 0x55b   :  { %v357_v12 = vmul.f32 -1.442695, %v306_v11 }
 0x55d   :  { %379 = vpow2.f32 %v357_v12 }
 0x563   :  { %v380_v13 = vpop.eup %379 }
 0x564   :  { %v311_v14 = vadd.f32 1.0, %v380_v13 }
 0x566   :  { %381 = vrcp.f32 %v311_v14  ;;  %v323_v18 = vand.u32 2147483648, %v311_v14  ;;  %v321_v20 = vand.u32 2147483647, %v311_v14  ;;  %vm317_vm13 = vweird.f32 %v311_v14 }
 0x568   :  { %v324_v22 = vor.u32 1.1754944e-38, %v323_v18  ;;  %vm322_vm0 = vcmp.eq.f32.partialorder %v321_v20, 8.507059e+37 }
 0x56c   :  { %v382_v15 = vpop.eup %381 }
 0x56d   :  { %v313_v16 = vmul.f32 %v382_v15, %v311_v14  ;;  %vm318_vm12 = vweird.f32 %v382_v15 }
 0x56e   :  { %vm319_vm14 = vmor %vm317_vm13, %vm318_vm12 }
 0x56f   :  { %v314_v17 = vsub.f32 1.0, %v313_v16 }
 0x571   :  { %v315_v19 = vmul.f32 %v382_v15, %v314_v17 }
 0x573   :  { %v316_v21 = vadd.f32 %v382_v15, %v315_v19 }
 0x575   :  { %v320_v23 = vsel %vm319_vm14, %v382_v15, %v316_v21 }
 0x576   :  { %v325_v25 = vsel %vm322_vm0, %v324_v22, %v320_v23 }
 0x577   :  { %v335_v27 = vsel %vm334_vm15, %v325_v25, %v328_v24 }
 0x578   :  { %v337_v28 = vsel %vm336_vm2, %v335_v27, %v332_v26 }
 0x579   :  { %v338_v29 = vsel %vm67_vm1, %v337_v28, 0.0 }
 0x57a   :  { %339 = vst [vmem:[%s492_s3] sm:$0x1] %v338_v29 }
 0x57b   :  { %344 = vsyncpa [#allocation3], 1 }
 0x57c   :  { %345 = vsyncpa [#allocation5], 1 }

</bundles_post_ra>
